<compile_context>
chip_gen: v5e
topology: v5e:2x2
jax: 0.10.0
libtpu: 0.0.40
codegen_flags: <defaults>
</compile_context>

<pallas_src>
from functools import partial

import jax
import jax.numpy as jnp
from jax.experimental import pallas as pl
from jax.experimental.pallas import tpu as pltpu

NUM_RELATIONS = 14   # adjacency channels: 0..10 shot types, 11/12 temporal, 13 complete
RSELF = 14           # relation slot used for the self-loop (identity adjacency)
RP = 16              # relation slots padded 14(+self) -> 16 so RP*H is a lane multiple
assert NUM_RELATIONS < RP


# ---------------------------------------------------------------------------
# Pallas kernel 1: fused embedding chain (biases folded into the weights)
#   y = ReLU([coord,1] @ Wc_aug) @ Wm1 + [player_emb,1] @ Wm2_aug
# (== coordination_transform -> ReLU -> concat(player_emb) -> model_input_linear)
# ---------------------------------------------------------------------------
def _embed_chain_kernel(coord_ref, pe_ref, wc_ref, wm1_ref, wm2_ref, o_ref):
    c = jnp.dot(coord_ref[...].astype(jnp.bfloat16), wc_ref[...],
                preferred_element_type=jnp.float32)
    c = jnp.maximum(c, 0.0)
    y = jnp.dot(c.astype(jnp.bfloat16), wm1_ref[...],
                preferred_element_type=jnp.float32)
    y = y + jnp.dot(pe_ref[...].astype(jnp.bfloat16), wm2_ref[...],
                    preferred_element_type=jnp.float32)
    o_ref[...] = y


def embed_chain(coord_seq, player_embedding, params):
    """coord_seq: (B, L, 2), player_embedding: (B, L, pd) -> (B, L, H)."""
    B, L, _ = coord_seq.shape
    M = B * L
    ones = jnp.ones((M, 1), jnp.float32)
    coord_aug = jnp.concatenate(
        [coord_seq.reshape(M, 2).astype(jnp.float32), ones], axis=1)       # (M, 3)
    pe_aug = jnp.concatenate(
        [player_embedding.reshape(M, -1).astype(jnp.float32), ones], axis=1)  # (M, pd+1)
    wc, wm1, wm2 = params["coord_w_aug"], params["mil_w1"], params["mil_w2_aug"]
    H = wm1.shape[1]

    def full(shape):
        return pl.BlockSpec(shape, lambda i: tuple(0 for _ in shape))

    out = pl.pallas_call(
        _embed_chain_kernel,
        out_shape=jax.ShapeDtypeStruct((M, H), jnp.float32),
        grid=(1,),
        in_specs=[full(coord_aug.shape), full(pe_aug.shape), full(wc.shape),
                  full(wm1.shape), full(wm2.shape)],
        out_specs=full((M, H)),
        compiler_params=pltpu.CompilerParams(dimension_semantics=("arbitrary",)),
    )(coord_aug, pe_aug, wc, wm1, wm2)
    return out.reshape(B, L, H)


# ---------------------------------------------------------------------------
# Pallas kernel 2: fused multi-layer relational GCN (basis decomposition)
#   per layer:  h <- ReLU( sum_r A_r @ h @ W_r )     (self-loop = relation RSELF, A=I)
# Batch and multiple independent graph passes are flattened into the M axis via a
# block-diagonal adjacency, so the whole thing is ONE grid step per pallas_call and
# the bf16 weights are DMA'd exactly once.
# ---------------------------------------------------------------------------
def _rgcn_fused_kernel(h_ref, a_ref, w_ref, o_ref, hwre_ref, *,
                       num_layers, m, h_dim, rp):
    x = h_ref[...]                                            # (M, H) f32
    for l in range(num_layers):                               # static unroll; weights stay in VMEM
        xb = x.astype(jnp.bfloat16)
        w_l = w_ref[l]                                        # (H, RP*H) bf16
        # per-relation dots written straight into the (RP*M, H) relation-major layout
        # (slot RSELF holds W_self; slot RP-1 is exact-zero padding)
        for r in range(rp):
            hwre_ref[r * m:(r + 1) * m, :] = jnp.dot(
                xb, w_l[:, r * h_dim:(r + 1) * h_dim],
                preferred_element_type=jnp.float32)
        # aggregate over relations + neighbours in one MXU pass (K = RP*M)
        x = jnp.maximum(
            jnp.dot(a_ref[...], hwre_ref[...], preferred_element_type=jnp.float32),
            0.0)
    o_ref[...] = x


def rgcn_forward_multi(params, problems):
    """Run the fused R-GCN on several independent (h, adjacency) problems at once.

    problems: list of (h, adjacency) with h: (B, N_i, H), adjacency: (B, R, N_i, N_i).
    Returns a list of (B, N_i, H) float32 outputs. All problems share the weights,
    are padded to a common node count Np and stacked as diagonal blocks of one big
    block-diagonal adjacency -> a single pallas_call / single grid step.
    """
    w_all = params["rgcn_w_all"]                       # (L, H, RP*H) bf16
    L, H = w_all.shape[0], w_all.shape[1]
    B = problems[0][0].shape[0]
    Ns = [h.shape[1] for h, _ in problems]
    Np = max(8, ((max(Ns) + 7) // 8) * 8)
    G = len(problems) * B                              # number of diagonal blocks
    M = G * Np

    h_blocks, a_blocks = [], []
    for (h, adj), N in zip(problems, Ns):
        hp = jnp.zeros((B, Np, H), jnp.float32).at[:, :N, :].set(h.astype(jnp.float32))
        at = jnp.transpose(adj.astype(jnp.float32), (0, 2, 1, 3))      # (B, N, R, N)
        ap = jnp.zeros((B, Np, RP, Np), jnp.float32).at[:, :N, :NUM_RELATIONS, :N].set(at)
        h_blocks.append(hp)
        a_blocks.append(ap)
    h_all = jnp.concatenate(h_blocks, axis=0)          # (G, Np, H)
    a_all = jnp.concatenate(a_blocks, axis=0)          # (G, Np, RP, Np)

    # self-loop relation: identity adjacency in slot RSELF (padded rows stay exact zero
    # because their h rows are zero and there is no bias / degree normalization)
    self_block = (jnp.eye(Np, dtype=jnp.float32)[None, :, None, :] *
                  jax.nn.one_hot(RSELF, RP, dtype=jnp.float32)[None, None, :, None])
    a_all = a_all + self_block

    # block-diagonal flatten: A_flat[g*Np+n, r*M + g'*Np + n'] = A_all[g,n,r,n'] * (g==g')
    a_big = a_all[:, :, :, None, :] * jnp.eye(G, dtype=jnp.float32)[:, None, None, :, None]
    a_flat = a_big.reshape(M, RP * M)
    h_flat = h_all.reshape(M, H)

    out = pl.pallas_call(
        partial(_rgcn_fused_kernel, num_layers=L, m=M, h_dim=H, rp=RP),
        out_shape=jax.ShapeDtypeStruct((M, H), jnp.float32),
        grid=(1,),
        in_specs=[
            pl.BlockSpec((M, H), lambda i: (0, 0)),                 # h (flattened blocks)
            pl.BlockSpec((M, RP * M), lambda i: (0, 0)),            # block-diag A
            pl.BlockSpec((L, H, RP * H), lambda i: (0, 0, 0)),      # all-layer weights (bf16)
        ],
        out_specs=pl.BlockSpec((M, H), lambda i: (0, 0)),
        scratch_shapes=[pltpu.VMEM((RP * M, H), jnp.float32)],      # relation-major h@W_r
        compiler_params=pltpu.CompilerParams(dimension_semantics=("arbitrary",)),
    )(h_flat, a_flat, w_all)

    out = out.reshape(len(problems), B, Np, H)
    return [out[i, :, :N, :] for i, N in enumerate(Ns)]


# ---------------------------------------------------------------------------
# One-time weight preparation (hoisted out of the per-forward path)
# ---------------------------------------------------------------------------
def prepare_params(params):
    p = dict(params)
    ld = params["coord_w"].shape[1]
    H = params["mil_w"].shape[1]

    # fold biases into the weights (ones-column augmentation); bf16 storage
    p["coord_w_aug"] = jnp.concatenate(
        [params["coord_w"], params["coord_b"].reshape(1, -1)], axis=0
    ).astype(jnp.bfloat16)                                              # (3, ld)
    # reference concat order is (coord_transform, player_embedding) -> rows [:ld] are coord
    p["mil_w1"] = params["mil_w"][:ld].astype(jnp.bfloat16)             # (ld, H)
    p["mil_w2_aug"] = jnp.concatenate(
        [params["mil_w"][ld:], params["mil_b"].reshape(1, -1)], axis=0
    ).astype(jnp.bfloat16)                                              # (pd+1, H)

    layers = []
    for layer in params["rgcn"]:
        R = layer["comb"].shape[0]
        assert R <= RSELF
        w_rel = jnp.einsum("rb,bij->rij", layer["comb"], layer["basis"])  # (R, H, H)
        w = jnp.zeros((RP, H, H), jnp.float32)
        w = w.at[:R].set(w_rel)
        w = w.at[RSELF].set(layer["w_self"])          # self loop packed as a relation
        # (H, RP*H): column block r holds W_r; slot RP-1 stays exact zero
        layers.append(jnp.transpose(w, (1, 0, 2)).reshape(H, RP * H))
    p["rgcn_w_all"] = jnp.stack(layers).astype(jnp.bfloat16)            # (L, H, RP*H)
    return p


# ---------------------------------------------------------------------------
# update_adjacency_matrix (static index bookkeeping -> one fused scatter)
# ---------------------------------------------------------------------------
def update_adjacency_matrix(batch_size, step, adjacency_matrix, shot_type_predict=False):
    N = step * 2
    dtype = adjacency_matrix.dtype
    new = jnp.zeros((batch_size, 13, N, N), dtype=dtype)
    complete = jnp.broadcast_to(
        (jnp.ones((N, N)) - jnp.eye(N)).astype(dtype), (batch_size, 1, N, N))
    adj = jnp.concatenate((new, complete), axis=1)
    adj = adj.at[:, :, :-2, :-2].set(adjacency_matrix)

    rel_idx, row_idx, col_idx, vals = [], [], [], []
    for row in range(N):
        node_index = row // 2
        if row % 2 == 0:
            col = (node_index + 1) * 2
            rel = 11 if node_index % 2 == 0 else 12
        else:
            col = (node_index + 1) * 2 + 1
            rel = 12 if node_index % 2 == 0 else 11
        if col <= N - 1:
            rel_idx += [rel, rel, 13, 13]
            row_idx += [row, col, row, col]
            col_idx += [col, row, col, row]
            vals += [1, 1, 0, 0]
    if rel_idx:
        adj = adj.at[:, jnp.array(rel_idx), jnp.array(row_idx),
                     jnp.array(col_idx)].set(jnp.array(vals, dtype=dtype))

    if shot_type_predict:
        idx = (step - 1) * 2 if step % 2 == 0 else (step - 1) * 2 + 1
        adj = adj.at[:, :, idx, :].set(0)
        adj = adj.at[:, :, :, idx].set(0)
    return adj


# ---------------------------------------------------------------------------
# Decoder forward
# ---------------------------------------------------------------------------
def decoder_forward(params, player, step, encode_node_embedding, adjacency_matrix,
                    player_A_x, player_A_y, player_B_x, player_B_y,
                    shot_type=None, train=False, first=False):
    batch_size = player.shape[0]

    prev_A = jnp.concatenate((player_A_x[..., None], player_A_y[..., None]),
                             axis=2).astype(jnp.float32)              # (B, T, 2)
    prev_B = jnp.concatenate((player_B_x[..., None], player_B_y[..., None]),
                             axis=2).astype(jnp.float32)              # (B, T, 2)
    player_embedding = params["player_embedding"][player]             # (B, 2T, pd)
    coord_seq = jnp.stack((prev_A, prev_B), axis=2).reshape(batch_size, -1, 2)

    # Fused Pallas kernel: coord linear + ReLU + concat(player_emb) + mil linear.
    initial_embedding = embed_chain(coord_seq, player_embedding, params)  # (B, 2T, H)

    if not first:
        # The reference recomputes the identical chain from the same inputs and
        # weights for this branch's model_input; reuse initial_embedding (identical).
        model_input0 = jnp.concatenate((encode_node_embedding, initial_embedding), axis=1)
        (tmp_embedding0,) = rgcn_forward_multi(
            params, [(model_input0, adjacency_matrix)])
        passed_node_embedding = jnp.concatenate(
            (encode_node_embedding[:, :-2, :], tmp_embedding0[:, -4:, :]), axis=1)
    else:
        passed_node_embedding = encode_node_embedding

    tmp_adjacency_matrix = update_adjacency_matrix(
        batch_size, step, adjacency_matrix, shot_type_predict=True)
    model_input = jnp.concatenate((passed_node_embedding, initial_embedding), axis=1)

    drop = (step - 1) * 2 if step % 2 == 0 else (step - 1) * 2 + 1
    tmp_model_input = jnp.concatenate(
        (model_input[:, :drop], model_input[:, drop + 1:]), axis=1)
    tmp_adj = jnp.concatenate(
        (tmp_adjacency_matrix[:, :, :drop], tmp_adjacency_matrix[:, :, drop + 1:]), axis=2)
    tmp_adj = jnp.concatenate((tmp_adj[:, :, :, :drop], tmp_adj[:, :, :, drop + 1:]), axis=3)

    # Build the final-pass adjacency now (train mode uses the ground-truth shot_type,
    # not the shot-type head output, so the two remaining rGCN passes are independent
    # and can be fused into a single pallas_call sharing one weight DMA).
    adjacency_matrix = update_adjacency_matrix(batch_size, step, adjacency_matrix)
    if train:
        if step % 2 == 0:
            i, j = (step - 2) * 2, (step - 1) * 2 + 1
        else:
            i, j = (step - 1) * 2, (step - 2) * 2 + 1
        b_idx = jnp.arange(batch_size)
        st = shot_type[:, 0]
        adjacency_matrix = adjacency_matrix.at[b_idx, st, i, j].set(1)
        adjacency_matrix = adjacency_matrix.at[b_idx, st, j, i].set(1)
        adjacency_matrix = adjacency_matrix.at[:, 13, i, j].set(0)
        adjacency_matrix = adjacency_matrix.at[:, 13, j, i].set(0)
    else:
        # TODO(synk): inference branch uses torch.multinomial shot-type sampling; not ported.
        raise NotImplementedError("only train=True is supported in this port")

    tmp_embedding, final_embedding = rgcn_forward_multi(
        params, [(tmp_model_input, tmp_adj), (model_input, adjacency_matrix)])

    B, Nt, H = tmp_embedding.shape
    padding = jnp.zeros((B, Nt + 1, H), dtype=tmp_embedding.dtype)
    if step % 2 == 0:
        padding = padding.at[:, :-2, :].set(tmp_embedding[:, :-1, :])
        padding = padding.at[:, -1, :].set(tmp_embedding[:, -1, :])
    else:
        padding = padding.at[:, :-1, :].set(tmp_embedding)

    shot_type_predict_emb = jnp.concatenate(
        (passed_node_embedding[:, :-2, :], padding[:, -4:, :]), axis=1)

    if step % 2 == 0:
        black_node = shot_type_predict_emb[:, (step - 1) * 2 + 1, :]
        white_node = shot_type_predict_emb[:, (step - 2) * 2, :]
    else:
        black_node = shot_type_predict_emb[:, (step - 2) * 2 + 1, :]
        white_node = shot_type_predict_emb[:, (step - 1) * 2, :]
    type_predict_node = jnp.concatenate((black_node, white_node), axis=-1)
    # tiny (B, 2H) @ (2H, type_num) head: below Pallas break-even, left to XLA.
    predict_shot_type_logit = type_predict_node @ params["pst_w"] + params["pst_b"]

    node_embedding = jnp.concatenate(
        (model_input[:, :-2, :], final_embedding[:, -2:, :]), axis=1)
    last_two_node = node_embedding[:, -2:, :].reshape(batch_size, -1)
    # tiny (B, 2H) @ (2H, 10) head: left to XLA.
    predict_xy = (last_two_node @ params["pxy_w"] + params["pxy_b"]).reshape(batch_size, 2, 5)

    return predict_xy, predict_shot_type_logit, adjacency_matrix, passed_node_embedding


# ---------------------------------------------------------------------------
# Deterministic parameter init (synthetic, no checkpoint)
# ---------------------------------------------------------------------------
def init_params(key, args):
    H = args["hidden_size"]
    pd, ld = args["player_dim"], args["location_dim"]
    nb, nl = args["num_basis"], args["num_layer"]
    keys = jax.random.split(key, 5 + 3 * nl)

    def norm(k, shape, scale=0.1):
        return (scale * jax.random.normal(k, shape)).astype(jnp.float32)

    params = {
        "player_embedding": norm(keys[0], (args["player_num"], pd)),
        "coord_w": norm(keys[1], (2, ld)),
        "coord_b": jnp.zeros((ld,), jnp.float32),
        "mil_w": norm(keys[2], (pd + ld, H)),
        "mil_b": jnp.zeros((H,), jnp.float32),
        "pst_w": norm(keys[3], (2 * H, args["type_num"])),
        "pst_b": jnp.zeros((args["type_num"],), jnp.float32),
        "pxy_w": norm(keys[4], (2 * H, 10)),
        "pxy_b": jnp.zeros((10,), jnp.float32),
        "rgcn": [
            {
                "basis": norm(keys[5 + 3 * l], (nb, H, H)),
                "comb": norm(keys[6 + 3 * l], (NUM_RELATIONS, nb)),
                "w_self": norm(keys[7 + 3 * l], (H, H)),
            }
            for l in range(nl)
        ],
    }
    return params


# ---------------------------------------------------------------------------
# Demo
# ---------------------------------------------------------------------------
if __name__ == "__main__":
    args = dict(player_num=4, player_dim=8, type_num=11, location_dim=8,
                hidden_size=32, num_layer=2, num_basis=3)
    step = 4
    batch = 2

    key = jax.random.PRNGKey(0)
    k = jax.random.split(key, 10)
    params = init_params(k[0], args)
    params = prepare_params(params)   # hoisted weight prep (once per parameter set)

    player = jax.random.randint(k[1], (batch, 2), 0, args["player_num"])
    player_A_x = jax.random.uniform(k[2], (batch, 1))
    player_A_y = jax.random.uniform(k[3], (batch, 1))
    player_B_x = jax.random.uniform(k[4], (batch, 1))
    player_B_y = jax.random.uniform(k[5], (batch, 1))
    shot_type = jax.random.randint(k[6], (batch, 1), 1, args["type_num"])

    n_prev = 2 * (step - 1)  # nodes in incoming adjacency
    adjacency = jnp.zeros((batch, NUM_RELATIONS, n_prev, n_prev), dtype=jnp.int32)
    adjacency = adjacency.at[:, 13].set(
        (jnp.ones((n_prev, n_prev)) - jnp.eye(n_prev)).astype(jnp.int32))

    # first=True path: encode_node_embedding has 2*(step-1) nodes
    encode_first = jax.random.normal(k[7], (batch, n_prev, args["hidden_size"]),
                                     dtype=jnp.float32)
    out_first = decoder_forward(params, player, step, encode_first, adjacency,
                                player_A_x, player_A_y, player_B_x, player_B_y,
                                shot_type=shot_type, train=True, first=True)
    jax.block_until_ready(out_first)

    # first=False path: encode_node_embedding has 2*(step-1) - 2 nodes
    encode_rest = jax.random.normal(k[8], (batch, n_prev - 2, args["hidden_size"]),
                                    dtype=jnp.float32)
    out_rest = decoder_forward(params, player, step, encode_rest, adjacency,
                               player_A_x, player_A_y, player_B_x, player_B_y,
                               shot_type=shot_type, train=True, first=False)
    jax.block_until_ready(out_rest)

    assert out_first[0].shape == (batch, 2, 5)
    assert out_first[1].shape == (batch, args["type_num"])
    assert out_first[2].shape == (batch, NUM_RELATIONS, 2 * step, 2 * step)
    assert out_rest[0].shape == (batch, 2, 5)
    assert bool(jnp.all(jnp.isfinite(out_first[0]))) and bool(jnp.all(jnp.isfinite(out_rest[0])))
    print("KERNEL_OK")
</pallas_src>

<mosaic_0001>
module attributes {stable_mosaic.version = 11 : i64} {
  func.func @_embed_chain_kernel(%arg0: i32, %arg1: memref<4x3xf32, #tpu.memory_space<vmem>>, %arg2: memref<4x9xf32, #tpu.memory_space<vmem>>, %arg3: memref<3x8xbf16, #tpu.memory_space<vmem>>, %arg4: memref<8x32xbf16, #tpu.memory_space<vmem>>, %arg5: memref<9x32xbf16, #tpu.memory_space<vmem>>, %arg6: memref<4x32xf32, #tpu.memory_space<vmem>>) attributes {dimension_semantics = [#tpu.dimension_semantics<arbitrary>], iteration_bounds = array<i64: 1>, scalar_prefetch = 0 : i64, scratch_operands = 0 : i64, tpu.core_type = #tpu.core_type<tc>, window_params = [{pipeline_mode = #tpu.pipeline_mode<synchronous>, transform_indices = @transform_0, window_bounds = array<i64: 4, 3>}, {pipeline_mode = #tpu.pipeline_mode<synchronous>, transform_indices = @transform_1, window_bounds = array<i64: 4, 9>}, {pipeline_mode = #tpu.pipeline_mode<synchronous>, transform_indices = @transform_2, window_bounds = array<i64: 3, 8>}, {pipeline_mode = #tpu.pipeline_mode<synchronous>, transform_indices = @transform_3, window_bounds = array<i64: 8, 32>}, {pipeline_mode = #tpu.pipeline_mode<synchronous>, transform_indices = @transform_4, window_bounds = array<i64: 9, 32>}, {pipeline_mode = #tpu.pipeline_mode<synchronous>, transform_indices = @transform_5, window_bounds = array<i64: 4, 32>}]} {
    %c0 = arith.constant 0 : index
    %c0_0 = arith.constant 0 : index
    %0 = vector.load %arg1[%c0, %c0_0] : memref<4x3xf32, #tpu.memory_space<vmem>>, vector<4x3xf32>
    %1 = arith.truncf %0 : vector<4x3xf32> to vector<4x3xbf16>
    %c0_1 = arith.constant 0 : index
    %c0_2 = arith.constant 0 : index
    %2 = vector.load %arg3[%c0_1, %c0_2] : memref<3x8xbf16, #tpu.memory_space<vmem>>, vector<3x8xbf16>
    %cst = arith.constant dense<0.000000e+00> : vector<4x8xf32>
    %3 = tpu.matmul %1, %2, %cst {dimension_numbers = #tpu.dot_dimension_numbers<[1], [0], [0], [1], [0, 0, 1, 1], [], []>} : vector<4x3xbf16>, vector<3x8xbf16>, vector<4x8xf32> -> vector<4x8xf32>
    %cst_3 = arith.constant 0.000000e+00 : f32
    %4 = vector.broadcast %cst_3 : f32 to vector<4x8xf32>
    %5 = arith.maximumf %3, %4 : vector<4x8xf32>
    %6 = arith.truncf %5 : vector<4x8xf32> to vector<4x8xbf16>
    %c0_4 = arith.constant 0 : index
    %c0_5 = arith.constant 0 : index
    %7 = vector.load %arg4[%c0_4, %c0_5] : memref<8x32xbf16, #tpu.memory_space<vmem>>, vector<8x32xbf16>
    %cst_6 = arith.constant dense<0.000000e+00> : vector<4x32xf32>
    %8 = tpu.matmul %6, %7, %cst_6 {dimension_numbers = #tpu.dot_dimension_numbers<[1], [0], [0], [1], [0, 0, 1, 1], [], []>} : vector<4x8xbf16>, vector<8x32xbf16>, vector<4x32xf32> -> vector<4x32xf32>
    %c0_7 = arith.constant 0 : index
    %c0_8 = arith.constant 0 : index
    %9 = vector.load %arg2[%c0_7, %c0_8] : memref<4x9xf32, #tpu.memory_space<vmem>>, vector<4x9xf32>
    %10 = arith.truncf %9 : vector<4x9xf32> to vector<4x9xbf16>
    %c0_9 = arith.constant 0 : index
    %c0_10 = arith.constant 0 : index
    %11 = vector.load %arg5[%c0_9, %c0_10] : memref<9x32xbf16, #tpu.memory_space<vmem>>, vector<9x32xbf16>
    %cst_11 = arith.constant dense<0.000000e+00> : vector<4x32xf32>
    %12 = tpu.matmul %10, %11, %cst_11 {dimension_numbers = #tpu.dot_dimension_numbers<[1], [0], [0], [1], [0, 0, 1, 1], [], []>} : vector<4x9xbf16>, vector<9x32xbf16>, vector<4x32xf32> -> vector<4x32xf32>
    %13 = arith.addf %8, %12 : vector<4x32xf32>
    %c0_12 = arith.constant 0 : index
    %c0_13 = arith.constant 0 : index
    %14 = vector.load %arg6[%c0_12, %c0_13] : memref<4x32xf32, #tpu.memory_space<vmem>>, vector<4x32xf32>
    tpu.vector_store %arg6[%c0_12, %c0_13], %13 {strides = array<i32>} : memref<4x32xf32, #tpu.memory_space<vmem>>, vector<4x32xf32>,
    return
  }
  func.func @transform_0(%arg0: i32) -> (i32, i32) {
    %c0_i32 = arith.constant 0 : i32
    %c0_i32_0 = arith.constant 0 : i32
    %c0_i32_1 = arith.constant 0 : i32
    return %c0_i32, %c0_i32_0 : i32, i32
  }
  func.func @transform_1(%arg0: i32) -> (i32, i32) {
    %c0_i32 = arith.constant 0 : i32
    %c0_i32_0 = arith.constant 0 : i32
    %c0_i32_1 = arith.constant 0 : i32
    return %c0_i32, %c0_i32_0 : i32, i32
  }
  func.func @transform_2(%arg0: i32) -> (i32, i32) {
    %c0_i32 = arith.constant 0 : i32
    %c0_i32_0 = arith.constant 0 : i32
    %c0_i32_1 = arith.constant 0 : i32
    return %c0_i32, %c0_i32_0 : i32, i32
  }
  func.func @transform_3(%arg0: i32) -> (i32, i32) {
    %c0_i32 = arith.constant 0 : i32
    %c0_i32_0 = arith.constant 0 : i32
    %c0_i32_1 = arith.constant 0 : i32
    return %c0_i32, %c0_i32_0 : i32, i32
  }
  func.func @transform_4(%arg0: i32) -> (i32, i32) {
    %c0_i32 = arith.constant 0 : i32
    %c0_i32_0 = arith.constant 0 : i32
    %c0_i32_1 = arith.constant 0 : i32
    return %c0_i32, %c0_i32_0 : i32, i32
  }
  func.func @transform_5(%arg0: i32) -> (i32, i32) {
    %c0_i32 = arith.constant 0 : i32
    %c0_i32_0 = arith.constant 0 : i32
    %c0_i32_1 = arith.constant 0 : i32
    return %c0_i32, %c0_i32_0 : i32, i32
  }
}

</mosaic_0001>

<bundles_post_ra>
// kernel: tpu_custom_call.1
= control target key start
LH: loop header
LB: loop body
LE: loop exit
PB: predicated region body
PF: predicated region fallthrough
CT: control target
= control target key end

     0   :  { %10 = vsyncpa [#allocation3], 0  ;;  %s422_s0 = inlined_call_operand.hbm [shape: f32[4,3], index: 0, kind: input, shape index: {}]   ;;  %s423_s1 = inlined_call_operand.hbm [shape: f32[4,9], index: 1, kind: input, shape index: {}]   ;;  %s424_s2 = inlined_call_operand.hbm [shape: bf16[3,8], index: 2, kind: input, shape index: {}]   ;;  %s425_s3 = inlined_call_operand.hbm [shape: bf16[8,32], index: 3, kind: input, shape index: {}]   ;;  %s426_s4 = inlined_call_operand.hbm [shape: bf16[9,32], index: 4, kind: input, shape index: {}]   ;;  %s427_s5 = inlined_call_operand.hbm [shape: f32[4,32], index: 5, kind: output, shape index: {}]  }
   0x1   :  { %11 = vsyncpa [#allocation6], 0 }
   0x2   :  { %12 = vsyncpa [#allocation9], 0  ;;  %s30_s20 = sshll.u32 %s423_s1, 4  ;;  %s31_s20 = int_to_ptr.hbm [resolvable:$true] %s30_s20 }
   0x3   :  { %13 = vsyncpa [#allocation4], 0  ;;  %s365_s21 = smov [#allocation5]   ;;  %s52_s25 = sshll.u32 %s425_s3, 4  ;;  %s53_s25 = int_to_ptr.hbm [resolvable:$true] %s52_s25 }
   0x4   :  { %s32_s22 = sshll.u32 %s365_s21, 4  ;;  %s366_s26 = smov [#allocation8]   ;;  %s33_s22 = int_to_ptr.vmem [resolvable:$true] %s32_s22 }
   0x5   :  { %35 = dma.hbm_to_vmem [thread:$0]  %s31_s20, 64, %s33_s22, [#allocation6]  }
   0x6   :  { %s54_s27 = sshll.u32 %s366_s26, 4  ;;  %s19_s30 = sshll.u32 %s422_s0, 4  ;;  %s55_s27 = int_to_ptr.vmem [resolvable:$true] %s54_s27  ;;  %s20_s30 = int_to_ptr.hbm [resolvable:$true] %s19_s30 }
   0x7   :  { %57 = dma.hbm_to_vmem [thread:$0]  %s53_s25, 64, %s55_s27, [#allocation9]  }
   0x8   :  { %s41_s7 = sshll.u32 %s424_s2, 4  ;;  %s367_s8 = smov [#allocation2]   ;;  %s42_s7 = int_to_ptr.hbm [resolvable:$true] %s41_s7 }
   0x9   :  { %s21_s9 = sshll.u32 %s367_s8, 4  ;;  %s368_s3 = smov [#allocation7]   ;;  %s22_s9 = int_to_ptr.vmem [resolvable:$true] %s21_s9 }
   0xa   :  { %24 = dma.hbm_to_vmem [thread:$0]  %s20_s30, 64, %s22_s9, [#allocation3]  }
   0xb   :  { %s43_s10 = sshll.u32 %s368_s3, 4  ;;  %s62_s13 = sshll.u32 %s426_s4, 4  ;;  %s44_s10 = int_to_ptr.vmem [resolvable:$true] %s43_s10  ;;  %s63_s13 = int_to_ptr.hbm [resolvable:$true] %s62_s13 }
   0xc   :  { %46 = dma.hbm_to_vmem [thread:$0]  %s42_s7, 32, %s44_s10, [#allocation6]  }
   0xd   :  { %s369_s0 = smov [#allocation10]   ;;  %s370_s15 = smov 64  }
   0xe   :  { %s64_s14 = sshll.u32 %s369_s0, 4  ;;  %s371_s16 = smov 4   ;;  %s65_s14 = int_to_ptr.vmem [resolvable:$true] %s64_s14 }
   0xf   :  { %70 = dma.hbm_to_vmem [thread:$0]  %s63_s13, 128, %s65_s14, [#allocation9], %s370_s15, %s370_s15, %s371_s16  }
  0x10   :  { %357 = dma.done.wait [#allocation3], 64  }
  0x11   :  { %358 = vsyncadd [#allocation3], 4294967232 }
  0x12   :  { %359 = dma.done.wait [#allocation6], 96  }
  0x13   :  { %360 = vsyncadd [#allocation6], 4294967200 }
  0x14   :  { %361 = dma.done.wait [#allocation9], 192  }
  0x15   :  { %362 = vsyncadd [#allocation9], 4294967104  ;;  %vm99_vm0 = vcmask 1040384   ;;  %vm100_vm1 = vcmask 1041408   ;;  %v372_v0 = vmov 65535   ;;  %vm95_vm2 = vcmask 23552  }
  0x16   :  { %v101_v1 = vsel %vm99_vm0, 4294967295, %v372_v0  ;;  %v94_v3 = vld [vmem:[#allocation7] sm:$0x3]  ;;  %v92_v4 = vld [vmem:[#allocation2] sm:$0xf]  ;;  %vm135_vm3 = vcmask 1043456  }
  0x17   :  { %v102_v2 = vsel %vm100_vm1, %v101_v1, 0  ;;  %v93_v6 = vpack.c.bf16 %v92_v4, %v92_v4  ;;  %v199_v7 = vld [vmem:[#allocation10] sm:$0xf]  ;;  %v203_v8 = vld [vmem:[#allocation10] sm:$0x10]  ;;  %vm136_vm4 = vcmask 1044480  }
  0x18   :  { %v104_v5 = vand.u32 %v102_v2, %v94_v3  ;;  %v200_v9 = vor.u32 %v203_v8, %v199_v7  ;;  %v137_v10 = vsel %vm135_vm3, 4294967295, %v372_v0  ;;  %v121_v13 = vld [vmem:[#allocation8] sm:$0xf]  ;;  %v122_v14 = vld [vmem:[#allocation5] sm:$0xf]  ;;  %vm131_vm5 = vcmask 72704  }
  0x19   :  { %v138_v11 = vsel %vm136_vm4, %v137_v10, 0  ;;  %v160_v15 = vsel %vm135_vm3, %v121_v13, 0  ;;  %v123_v16 = vpack.c.bf16 %v122_v14, %v122_v14  ;;  %vm155_vm6 = vcmask 64512   ;;  %s373_s2 = smov [#allocation11]   ;;  %s184_s19 = sshll.u32 %s427_s5, 4  ;;  %s185_s19 = int_to_ptr.hbm [resolvable:$true] %s184_s19 }
  0x1a   :  { %113 = vmatpush.bf16.msra.mxu0 %v104_v5  ;;  %v140_v12 = vand.u32 %v200_v9, %v138_v11  ;;  %169 = vmatpush.bf16.msra.mxu2 %v160_v15  ;;  %s182_s4 = sshll.u32 %s373_s2, 4  ;;  %vm175_vm7 = vcmask 257024   ;;  %s183_s4 = int_to_ptr.vmem [resolvable:$true] %s182_s4 }
  0x1c   :  { %149 = vmatpush.bf16.msra.mxu1 %v140_v12 }
  0x1d   :  { %196 = vmatmul.msk.bf16.vlgmr.msra.gmra.mxu0 %vm95_vm2, %v93_v6 }
  0x1f   :  { %201 = vmatmul.msk.bf16.vlgmr.msra.gmra.mxu1 %vm131_vm5, %v123_v16 }
  0x9a   :  { %v115_v17 = vpop.f32.mrf.mxu0 }
  0x9b   :  { %v119_v18 = vmax.f32 %v115_v17, 0.0 }
  0x9c   :  { %v151_v21 = vpop.f32.mrf.mxu1 }
  0x9d   :  { %v120_v19 = vpack.c.bf16 %v119_v18, %v119_v18 }
  0x9f   :  { %202 = vmatmul.msk.bf16.vlgmr.msra.gmra.mxu2 %vm155_vm6, %v120_v19 }
  0xa2   :  { %v117_v20 = vpop.f32.mrf.mxu0 }
  0xa4   :  { %v153_v22 = vpop.f32.mrf.mxu1 }
 0x122   :  { %v171_v23 = vpop.f32.mrf.mxu2 }
 0x123   :  { %v172_v24 = vadd.f32 %v171_v23, %v151_v21 }
 0x125   :  { %176 = vst.msk [vmem:[#allocation11] sm:$0xf] %vm175_vm7, %v172_v24 }
 0x126   :  { %187 = dma.vmem_to_hbm [thread:$0]  %s183_s4, 64, %s185_s19, [#allocation4]  }
 0x12a   :  { %v173_v25 = vpop.f32.mrf.mxu2 }
 0x12b   :  { %363 = dma.done.wait [#allocation4], 64  }
 0x12c   :  { %364 = vsyncadd [#allocation4], 4294967232 }
 0x12d   :  { %192 = vsyncpa [#allocation3], 1 }
 0x12e   :  { %193 = vsyncpa [#allocation6], 1 }
 0x12f   :  { %194 = vsyncpa [#allocation9], 1 }
 0x130   :  { %195 = vsyncpa [#allocation4], 1 }

</bundles_post_ra>
